<compile_context>
chip_gen: v6e
topology: v6e:2x2x1
jax: 0.10.0
libtpu: 0.0.40
codegen_flags: <defaults>
</compile_context>

<pallas_src>
import functools

import jax
import jax.numpy as jnp
from jax.experimental import pallas as pl
from jax.experimental.pallas import tpu as pltpu


def _round_up(n, m):
    return ((n + m - 1) // m) * m


# ----------------------------------------------------------------------------
# Kernel: fused actor+critic trunk (block-diagonal lane packing) + fused head.
# ----------------------------------------------------------------------------
def _fused_heads_kernel(scale, shift, action_dim, s_pad, h_pad,
                        x_ref, slab_ref, bias_ref, out_ref):
    f32 = jnp.float32
    x = x_ref[...]                      # (tb, s_pad), bf16 (default) or f32
    cdt = x.dtype                       # MXU operand dtype
    biases = bias_ref[...]              # (8, h_pad) f32 — kept full precision

    def dense(hh, row_off, rows, b_idx, cols):
        w = slab_ref[row_off:row_off + rows, 0:cols]          # static slab slice
        y = jnp.dot(hh, w, preferred_element_type=f32)
        return y + biases[b_idx:b_idx + 1, 0:cols]

    # Trunk: actor hidden in lanes [0,H), critic hidden in lanes [H,2H); one tanh pass per layer.
    h = jnp.tanh(dense(x, 0, s_pad, 0, h_pad)).astype(cdt)
    h = jnp.tanh(dense(h, s_pad, h_pad, 1, h_pad)).astype(cdt)
    h = jnp.tanh(dense(h, s_pad + 1 * h_pad, h_pad, 2, h_pad)).astype(cdt)
    h = jnp.tanh(dense(h, s_pad + 2 * h_pad, h_pad, 3, h_pad)).astype(cdt)

    # Fused head: lanes [0,A)=mu_pre, [A,2A)=sigma_pre, [2A]=value_pre.  Only the first 128
    # lanes carry outputs, so restrict the head matmul to them (lane-dense output tile).
    out_w = out_ref.shape[-1]                                  # 128
    pre = dense(h, s_pad + 3 * h_pad, h_pad, 4, out_w)         # (tb, 128) f32

    lane = jax.lax.broadcasted_iota(jnp.int32, pre.shape, 1)
    is_mu = lane < action_dim
    is_sigma = jnp.logical_and(lane >= action_dim, lane < 2 * action_dim)

    # Single EUP exp pass: exp(2p) on mu lanes (tanh via identity), exp(p) on sigma lanes.
    # Clip mu lanes so exp(2p) never overflows (tanh(+-20) == +-1 in f32 anyway).
    q = jnp.where(is_mu, 2.0 * jnp.clip(pre, -20.0, 20.0), pre)
    e = jnp.exp(q)
    tanh_p = (e - 1.0) * pl.reciprocal(e + 1.0, approx=True)
    mu = shift + scale * tanh_p
    out = jnp.where(is_mu, mu, jnp.where(is_sigma, e, pre))    # value (+ padded) lanes: raw pre
    out_ref[...] = out.astype(out_ref.dtype)


# ----------------------------------------------------------------------------
# Packing: one padded weight slab (bf16 by default) + one small f32 bias array.
# Row layout: [W1 fused (s_pad rows) | W2 | W3 | W4 | W_head (h_pad rows each)].
# W1 = [W1_actor | W1_critic] side by side; W2..W4 are block-diagonal; head packs
# [Wmu | Wsig] from the actor half and w_value from the critic half.
# ----------------------------------------------------------------------------
def pack_ppo_head_params(actor_p, critic_p, dtype=jnp.bfloat16):
    s, h = actor_p["w1"].shape
    assert critic_p["w1"].shape == (s, h), "actor/critic must share state_dim and hidden_size"
    a = actor_p["wmu"].shape[1]
    assert 2 * a + 1 <= 128, "mu|sigma|value must fit one 128-lane output tile"

    # Lane width of the fused hidden tile (256-multiple for big hiddens feeds v6e/v7x MXU fully).
    lane_mult = 256 if 2 * h >= 256 else 128
    h_pad = _round_up(2 * h, lane_mult)
    s_pad = _round_up(s, 16)            # keeps every slab row-slice sublane-aligned even in bf16

    rows = s_pad + 4 * h_pad
    slab = jnp.zeros((rows, h_pad), jnp.float32)

    # Layer 1: shared input x -> [W1_a | W1_c].
    slab = slab.at[0:s, 0:h].set(actor_p["w1"])
    slab = slab.at[0:s, h:2 * h].set(critic_p["w1"])
    # Layers 2..4: block diagonal.
    for i, name in enumerate(["w2", "w3", "w4"]):
        off = s_pad + i * h_pad
        slab = slab.at[off:off + h, 0:h].set(actor_p[name])
        slab = slab.at[off + h:off + 2 * h, h:2 * h].set(critic_p[name])
    # Head.
    off = s_pad + 3 * h_pad
    slab = slab.at[off:off + h, 0:a].set(actor_p["wmu"])
    slab = slab.at[off:off + h, a:2 * a].set(actor_p["wsig"])
    slab = slab.at[off + h:off + 2 * h, 2 * a:2 * a + 1].set(critic_p["w5"])

    biases = jnp.zeros((8, h_pad), jnp.float32)
    for i, name in enumerate(["b1", "b2", "b3", "b4"]):
        biases = biases.at[i, 0:h].set(actor_p[name].reshape(-1))
        biases = biases.at[i, h:2 * h].set(critic_p[name].reshape(-1))
    biases = biases.at[4, 0:a].set(actor_p["bmu"].reshape(-1))
    biases = biases.at[4, a:2 * a].set(actor_p["bsig"].reshape(-1))
    biases = biases.at[4, 2 * a:2 * a + 1].set(critic_p["b5"].reshape(-1))

    meta = {"state_dim": s, "s_pad": s_pad, "hidden": h, "h_pad": h_pad, "action_dim": a}
    return slab.astype(dtype), biases, meta


# ----------------------------------------------------------------------------
# Wrapper: PPOTransformer.forward_train minus the shared transformer.
# ----------------------------------------------------------------------------
def ppo_heads_forward(emb_state, slab, biases, meta, action_low, action_high, batch_tile=1024):
    """Returns (mu, sigma, value) with shapes (B, A), (B, A), (B, 1)."""
    b, s = emb_state.shape
    assert s == meta["state_dim"]
    s_pad, h_pad, a = meta["s_pad"], meta["h_pad"], meta["action_dim"]
    scale = float((action_high - action_low) / 2.0)
    shift = float((action_high + action_low) / 2.0)

    # Batch tiling: >=2 grid steps when batch allows (v7x megacore), minimal padding on the
    # last tile, tile rows a multiple of 8.
    n_tiles = max(pl.cdiv(b, batch_tile), 2 if b >= 16 else 1)
    tb = _round_up(pl.cdiv(b, n_tiles), 8)
    b_pad = tb * n_tiles

    xdt = slab.dtype
    if (b_pad, s_pad) == (b, s):
        x_p = emb_state.astype(xdt)
    else:
        x_p = jnp.zeros((b_pad, s_pad), xdt).at[:b, :s].set(emb_state.astype(xdt))

    # VMEM budget: double-buffered slab + biases + x tile + out tile, plus headroom.
    w_item = jnp.dtype(xdt).itemsize
    vmem_need = 2 * (slab.size * w_item + biases.size * 4
                     + tb * s_pad * w_item + tb * 128 * 4) + (4 << 20)
    vmem_limit = int(min(max(vmem_need, 8 << 20), 64 << 20))

    out = pl.pallas_call(
        functools.partial(_fused_heads_kernel, scale, shift, a, s_pad, h_pad),
        out_shape=jax.ShapeDtypeStruct((b_pad, 128), jnp.float32),
        grid=(n_tiles,),
        in_specs=[
            pl.BlockSpec((tb, s_pad), lambda i: (i, 0)),   # activations stream over batch
            pl.BlockSpec(slab.shape, lambda i: (0, 0)),    # whole weight slab, 1 DMA, reused
            pl.BlockSpec(biases.shape, lambda i: (0, 0)),  # f32 biases, tiny, reused
        ],
        out_specs=pl.BlockSpec((tb, 128), lambda i: (i, 0)),
        compiler_params=pltpu.CompilerParams(
            dimension_semantics=("parallel",),
            vmem_limit_bytes=vmem_limit,
        ),
    )(x_p, slab, biases)

    mu = out[:b, 0:a]
    sigma = out[:b, a:2 * a]
    value = out[:b, 2 * a:2 * a + 1]
    return mu, sigma, value


# ----------------------------------------------------------------------------
# Parameter init (matches PyTorch orthogonal_init; weights stored transposed [in, out]).
# ----------------------------------------------------------------------------
def _orthogonal(key, in_dim, out_dim, gain):
    w = jax.nn.initializers.orthogonal(scale=gain)(key, (out_dim, in_dim), jnp.float32)
    return w.T


def init_actor_params(key, state_dim, hidden_size, action_dim):
    keys = jax.random.split(key, 6)
    return {
        "w1": _orthogonal(keys[0], state_dim, hidden_size, 1.0), "b1": jnp.zeros((1, hidden_size)),
        "w2": _orthogonal(keys[1], hidden_size, hidden_size, 1.0), "b2": jnp.zeros((1, hidden_size)),
        "w3": _orthogonal(keys[2], hidden_size, hidden_size, 1.0), "b3": jnp.zeros((1, hidden_size)),
        "w4": _orthogonal(keys[3], hidden_size, hidden_size, 1.0), "b4": jnp.zeros((1, hidden_size)),
        "wmu": _orthogonal(keys[4], hidden_size, action_dim, 0.01), "bmu": jnp.zeros((1, action_dim)),
        "wsig": _orthogonal(keys[5], hidden_size, action_dim, 1.0), "bsig": jnp.zeros((1, action_dim)),
    }


def init_critic_params(key, state_dim, hidden_size):
    keys = jax.random.split(key, 5)
    return {
        "w1": _orthogonal(keys[0], state_dim, hidden_size, 1.0), "b1": jnp.zeros((1, hidden_size)),
        "w2": _orthogonal(keys[1], hidden_size, hidden_size, 1.0), "b2": jnp.zeros((1, hidden_size)),
        "w3": _orthogonal(keys[2], hidden_size, hidden_size, 1.0), "b3": jnp.zeros((1, hidden_size)),
        "w4": _orthogonal(keys[3], hidden_size, hidden_size, 1.0), "b4": jnp.zeros((1, hidden_size)),
        "w5": _orthogonal(keys[4], hidden_size, 1, 1.0), "b5": jnp.zeros((1, 1)),
    }


# ----------------------------------------------------------------------------
# Pure-JAX references (mirror the PyTorch module exactly).
# ----------------------------------------------------------------------------
def reference_actor(x, p, action_low, action_high):
    scale = (action_high - action_low) / 2.0
    shift = (action_high + action_low) / 2.0
    h = jnp.tanh(x @ p["w1"] + p["b1"])
    h = jnp.tanh(h @ p["w2"] + p["b2"])
    h = jnp.tanh(h @ p["w3"] + p["b3"])
    h = jnp.tanh(h @ p["w4"] + p["b4"])
    mu = shift + scale * jnp.tanh(h @ p["wmu"] + p["bmu"])
    sigma = jnp.exp(h @ p["wsig"] + p["bsig"])
    return mu, sigma


def reference_critic(x, p):
    h = jnp.tanh(x @ p["w1"] + p["b1"])
    h = jnp.tanh(h @ p["w2"] + p["b2"])
    h = jnp.tanh(h @ p["w3"] + p["b3"])
    h = jnp.tanh(h @ p["w4"] + p["b4"])
    return h @ p["w5"] + p["b5"]


if __name__ == "__main__":
    key = jax.random.PRNGKey(0)
    k_x, k_a, k_c = jax.random.split(key, 3)

    batch = 8
    d_model = 16          # emb_state feature dim (shared_transformer output width)
    hidden_size = 32
    action_dim = 4
    action_low = -2.0
    action_high = 2.0

    emb_state = jax.random.normal(k_x, (batch, d_model), jnp.float32)
    actor_params = init_actor_params(k_a, d_model, hidden_size, action_dim)
    critic_params = init_critic_params(k_c, d_model, hidden_size)

    mu_ref, sigma_ref = reference_actor(emb_state, actor_params, action_low, action_high)
    value_ref = reference_critic(emb_state, critic_params)

    # --- default path: bf16 MXU operands, f32 biases / epilogue ---
    slab_bf, biases, meta = pack_ppo_head_params(actor_params, critic_params, dtype=jnp.bfloat16)
    mu, sigma, value = ppo_heads_forward(emb_state, slab_bf, biases, meta, action_low, action_high)
    mu, sigma, value = jax.block_until_ready((mu, sigma, value))

    assert mu.shape == (batch, action_dim) and sigma.shape == (batch, action_dim)
    assert value.shape == (batch, 1)
    assert jnp.allclose(mu, mu_ref, atol=5e-2, rtol=5e-2)
    assert jnp.allclose(sigma, sigma_ref, atol=5e-2, rtol=5e-2)
    assert jnp.allclose(value, value_ref, atol=5e-2, rtol=5e-2)

    # --- f32 slab path (tight check; only mu carries the approx-reciprocal error) ---
    slab_f32, biases_f, meta_f = pack_ppo_head_params(actor_params, critic_params, dtype=jnp.float32)
    mu_f, sigma_f, value_f = ppo_heads_forward(emb_state, slab_f32, biases_f, meta_f,
                                               action_low, action_high)
    mu_f, sigma_f, value_f = jax.block_until_ready((mu_f, sigma_f, value_f))
    assert jnp.allclose(mu_f, mu_ref, atol=1e-2, rtol=1e-2)
    assert jnp.allclose(sigma_f, sigma_ref, atol=1e-4, rtol=1e-4)
    assert jnp.allclose(value_f, value_ref, atol=1e-4, rtol=1e-4)

    print("KERNEL_OK")
</pallas_src>

<mosaic_0001>
module attributes {stable_mosaic.version = 11 : i64} {
  func.func @_fused_heads_kernel(%arg0: i32, %arg1: memref<8x16xbf16, #tpu.memory_space<vmem>>, %arg2: memref<528x128xbf16, #tpu.memory_space<vmem>>, %arg3: memref<8x128xf32, #tpu.memory_space<vmem>>, %arg4: memref<8x128xf32, #tpu.memory_space<vmem>>) attributes {dimension_semantics = [#tpu.dimension_semantics<parallel>], iteration_bounds = array<i64: 1>, scalar_prefetch = 0 : i64, scratch_operands = 0 : i64, tpu.core_type = #tpu.core_type<tc>, window_params = [{transform_indices = @transform_0, window_bounds = array<i64: 8, 16>}, {pipeline_mode = #tpu.pipeline_mode<synchronous>, transform_indices = @transform_1, window_bounds = array<i64: 528, 128>}, {pipeline_mode = #tpu.pipeline_mode<synchronous>, transform_indices = @transform_2, window_bounds = array<i64: 8, 128>}, {transform_indices = @transform_3, window_bounds = array<i64: 8, 128>}]} {
    %c0 = arith.constant 0 : index
    %c0_0 = arith.constant 0 : index
    %0 = vector.load %arg1[%c0, %c0_0] : memref<8x16xbf16, #tpu.memory_space<vmem>>, vector<8x16xbf16>
    %c0_1 = arith.constant 0 : index
    %c0_2 = arith.constant 0 : index
    %1 = vector.load %arg3[%c0_1, %c0_2] : memref<8x128xf32, #tpu.memory_space<vmem>>, vector<8x128xf32>
    %c0_3 = arith.constant 0 : index
    %c0_4 = arith.constant 0 : index
    %2 = vector.load %arg2[%c0_3, %c0_4] : memref<528x128xbf16, #tpu.memory_space<vmem>>, vector<16x128xbf16>
    %cst = arith.constant dense<0.000000e+00> : vector<8x128xf32>
    %3 = tpu.matmul %0, %2, %cst {dimension_numbers = #tpu.dot_dimension_numbers<[1], [0], [0], [1], [0, 0, 1, 1], [], []>} : vector<8x16xbf16>, vector<16x128xbf16>, vector<8x128xf32> -> vector<8x128xf32>
    %4 = vector.extract_strided_slice %1 {offsets = [0, 0], sizes = [1, 128], strides = [1, 1]} : vector<8x128xf32> to vector<1x128xf32>
    %5 = vector.broadcast %4 : vector<1x128xf32> to vector<8x128xf32>
    %6 = arith.addf %3, %5 : vector<8x128xf32>
    %7 = math.tanh %6 : vector<8x128xf32>
    %8 = arith.truncf %7 : vector<8x128xf32> to vector<8x128xbf16>
    %c16 = arith.constant 16 : index
    %c0_5 = arith.constant 0 : index
    %9 = vector.load %arg2[%c16, %c0_5] : memref<528x128xbf16, #tpu.memory_space<vmem>>, vector<128x128xbf16>
    %cst_6 = arith.constant dense<0.000000e+00> : vector<8x128xf32>
    %10 = tpu.matmul %8, %9, %cst_6 {dimension_numbers = #tpu.dot_dimension_numbers<[1], [0], [0], [1], [0, 0, 1, 1], [], []>} : vector<8x128xbf16>, vector<128x128xbf16>, vector<8x128xf32> -> vector<8x128xf32>
    %11 = vector.extract_strided_slice %1 {offsets = [1, 0], sizes = [1, 128], strides = [1, 1]} : vector<8x128xf32> to vector<1x128xf32>
    %12 = vector.broadcast %11 : vector<1x128xf32> to vector<8x128xf32>
    %13 = arith.addf %10, %12 : vector<8x128xf32>
    %14 = math.tanh %13 : vector<8x128xf32>
    %15 = arith.truncf %14 : vector<8x128xf32> to vector<8x128xbf16>
    %c144 = arith.constant 144 : index
    %c0_7 = arith.constant 0 : index
    %16 = vector.load %arg2[%c144, %c0_7] : memref<528x128xbf16, #tpu.memory_space<vmem>>, vector<128x128xbf16>
    %cst_8 = arith.constant dense<0.000000e+00> : vector<8x128xf32>
    %17 = tpu.matmul %15, %16, %cst_8 {dimension_numbers = #tpu.dot_dimension_numbers<[1], [0], [0], [1], [0, 0, 1, 1], [], []>} : vector<8x128xbf16>, vector<128x128xbf16>, vector<8x128xf32> -> vector<8x128xf32>
    %18 = vector.extract_strided_slice %1 {offsets = [2, 0], sizes = [1, 128], strides = [1, 1]} : vector<8x128xf32> to vector<1x128xf32>
    %19 = vector.broadcast %18 : vector<1x128xf32> to vector<8x128xf32>
    %20 = arith.addf %17, %19 : vector<8x128xf32>
    %21 = math.tanh %20 : vector<8x128xf32>
    %22 = arith.truncf %21 : vector<8x128xf32> to vector<8x128xbf16>
    %c272 = arith.constant 272 : index
    %c0_9 = arith.constant 0 : index
    %23 = vector.load %arg2[%c272, %c0_9] : memref<528x128xbf16, #tpu.memory_space<vmem>>, vector<128x128xbf16>
    %cst_10 = arith.constant dense<0.000000e+00> : vector<8x128xf32>
    %24 = tpu.matmul %22, %23, %cst_10 {dimension_numbers = #tpu.dot_dimension_numbers<[1], [0], [0], [1], [0, 0, 1, 1], [], []>} : vector<8x128xbf16>, vector<128x128xbf16>, vector<8x128xf32> -> vector<8x128xf32>
    %25 = vector.extract_strided_slice %1 {offsets = [3, 0], sizes = [1, 128], strides = [1, 1]} : vector<8x128xf32> to vector<1x128xf32>
    %26 = vector.broadcast %25 : vector<1x128xf32> to vector<8x128xf32>
    %27 = arith.addf %24, %26 : vector<8x128xf32>
    %28 = math.tanh %27 : vector<8x128xf32>
    %29 = arith.truncf %28 : vector<8x128xf32> to vector<8x128xbf16>
    %c400 = arith.constant 400 : index
    %c0_11 = arith.constant 0 : index
    %30 = vector.load %arg2[%c400, %c0_11] : memref<528x128xbf16, #tpu.memory_space<vmem>>, vector<128x128xbf16>
    %cst_12 = arith.constant dense<0.000000e+00> : vector<8x128xf32>
    %31 = tpu.matmul %29, %30, %cst_12 {dimension_numbers = #tpu.dot_dimension_numbers<[1], [0], [0], [1], [0, 0, 1, 1], [], []>} : vector<8x128xbf16>, vector<128x128xbf16>, vector<8x128xf32> -> vector<8x128xf32>
    %32 = vector.extract_strided_slice %1 {offsets = [4, 0], sizes = [1, 128], strides = [1, 1]} : vector<8x128xf32> to vector<1x128xf32>
    %33 = vector.broadcast %32 : vector<1x128xf32> to vector<8x128xf32>
    %34 = arith.addf %31, %33 : vector<8x128xf32>
    %35 = tpu.iota {dimensions = array<i32: 1>} : vector<8x128xi32>
    %c4_i32 = arith.constant 4 : i32
    %36 = vector.broadcast %c4_i32 : i32 to vector<8x128xi32>
    %37 = arith.cmpi slt, %35, %36 : vector<8x128xi32>
    %c4_i32_13 = arith.constant 4 : i32
    %38 = vector.broadcast %c4_i32_13 : i32 to vector<8x128xi32>
    %39 = arith.cmpi sge, %35, %38 : vector<8x128xi32>
    %c8_i32 = arith.constant 8 : i32
    %40 = vector.broadcast %c8_i32 : i32 to vector<8x128xi32>
    %41 = arith.cmpi slt, %35, %40 : vector<8x128xi32>
    %42 = arith.andi %39, %41 : vector<8x128xi1>
    %cst_14 = arith.constant -2.000000e+01 : f32
    %cst_15 = arith.constant 2.000000e+01 : f32
    %43 = vector.broadcast %cst_14 : f32 to vector<8x128xf32>
    %44 = arith.maximumf %43, %34 : vector<8x128xf32>
    %45 = vector.broadcast %cst_15 : f32 to vector<8x128xf32>
    %46 = arith.minimumf %45, %44 : vector<8x128xf32>
    %cst_16 = arith.constant 2.000000e+00 : f32
    %47 = vector.broadcast %cst_16 : f32 to vector<8x128xf32>
    %48 = arith.mulf %47, %46 : vector<8x128xf32>
    %49 = arith.select %37, %48, %34 : vector<8x128xi1>, vector<8x128xf32>
    %50 = math.exp %49 : vector<8x128xf32>
    %cst_17 = arith.constant 1.000000e+00 : f32
    %51 = vector.broadcast %cst_17 : f32 to vector<8x128xf32>
    %52 = arith.subf %50, %51 : vector<8x128xf32>
    %cst_18 = arith.constant 1.000000e+00 : f32
    %53 = vector.broadcast %cst_18 : f32 to vector<8x128xf32>
    %54 = arith.addf %50, %53 : vector<8x128xf32>
    %55 = tpu.reciprocal %54 {approx = true} : vector<8x128xf32> -> vector<8x128xf32>
    %56 = arith.mulf %52, %55 : vector<8x128xf32>
    %cst_19 = arith.constant 2.000000e+00 : f32
    %57 = vector.broadcast %cst_19 : f32 to vector<8x128xf32>
    %58 = arith.mulf %57, %56 : vector<8x128xf32>
    %cst_20 = arith.constant 0.000000e+00 : f32
    %59 = vector.broadcast %cst_20 : f32 to vector<8x128xf32>
    %60 = arith.addf %59, %58 : vector<8x128xf32>
    %61 = arith.select %42, %50, %34 : vector<8x128xi1>, vector<8x128xf32>
    %62 = arith.select %37, %60, %61 : vector<8x128xi1>, vector<8x128xf32>
    %c0_21 = arith.constant 0 : index
    %c0_22 = arith.constant 0 : index
    %63 = vector.load %arg4[%c0_21, %c0_22] : memref<8x128xf32, #tpu.memory_space<vmem>>, vector<8x128xf32>
    tpu.vector_store %arg4[%c0_21, %c0_22], %62 {strides = array<i32>} : memref<8x128xf32, #tpu.memory_space<vmem>>, vector<8x128xf32>,
    return
  }
  func.func @transform_0(%arg0: i32) -> (i32, i32) {
    %c0_i32 = arith.constant 0 : i32
    %c0_i32_0 = arith.constant 0 : i32
    return %arg0, %c0_i32 : i32, i32
  }
  func.func @transform_1(%arg0: i32) -> (i32, i32) {
    %c0_i32 = arith.constant 0 : i32
    %c0_i32_0 = arith.constant 0 : i32
    %c0_i32_1 = arith.constant 0 : i32
    return %c0_i32, %c0_i32_0 : i32, i32
  }
  func.func @transform_2(%arg0: i32) -> (i32, i32) {
    %c0_i32 = arith.constant 0 : i32
    %c0_i32_0 = arith.constant 0 : i32
    %c0_i32_1 = arith.constant 0 : i32
    return %c0_i32, %c0_i32_0 : i32, i32
  }
  func.func @transform_3(%arg0: i32) -> (i32, i32) {
    %c0_i32 = arith.constant 0 : i32
    %c0_i32_0 = arith.constant 0 : i32
    return %arg0, %c0_i32 : i32, i32
  }
}

</mosaic_0001>

<bundles_post_ra>
// kernel: tpu_custom_call.1
= control target key start
LH: loop header
LB: loop body
LE: loop exit
PB: predicated region body
PF: predicated region fallthrough
CT: control target
= control target key end

     0   :  { %8 = vsyncpa [#allocation3], 0  ;;  %s988_s0 = inlined_call_operand.hbm [shape: bf16[8,16], index: 0, kind: input, shape index: {}]   ;;  %s989_s1 = inlined_call_operand.hbm [shape: bf16[528,128], index: 1, kind: input, shape index: {}]   ;;  %s990_s2 = inlined_call_operand.hbm [shape: f32[8,128], index: 2, kind: input, shape index: {}]   ;;  %s991_s3 = inlined_call_operand.hbm [shape: f32[8,128], index: 3, kind: output, shape index: {}]  }
   0x1   :  { %9 = vsyncpa [#allocation6], 0 }
   0x2   :  { %10 = vsyncpa [#allocation4], 0  ;;  %s887_s12 = smov [#allocation5]  }
   0x3   :  { %s26_s13 = sshll.u32 %s887_s12, 4  ;;  %s27_s13 = int_to_ptr.vmem [resolvable:$true] %s26_s13 }
   0x4   :  { %s809_s14 = scalar_lea.vmem %s27_s13, 4224  ;;  %p814_p1 = scmp.lt.s32.totalorder %s27_s13, %s27_s13 }
   0x5   :  { %p810_p0 = scmp.ne.s32.totalorder %s27_s13, %s809_s14  ;;  %p815_p2 = scmp.lt.s32.totalorder %s809_s14, %s809_s14 }
   0x7   :  { %p816_p3 = por %p815_p2, %p814_p1 }
   0x9   :  { %p817_p4 = pnand %p816_p3, %p810_p0 }
   0xb   :  { %820 = shalt.err (!%p817_p4)
}
   0xc   :  { %s888_s15 = smov 64   ;;  %s889_s16 = smov 4  }
   0xd   :  { %32 = dma.hbm_to_vmem [thread:$0]  %s989_s1, 4224, %s27_s13, [#allocation6], %s888_s15, %s888_s15, %s889_s16  }
   0xe   :  { %s890_s19 = smov [#allocation2]   ;;  %s891_s21 = smov [#allocation7]  }
   0xf   :  { %s17_s20 = sshll.u32 %s890_s19, 4  ;;  %s39_s22 = sshll.u32 %s891_s21, 4  ;;  %s18_s20 = int_to_ptr.vmem [resolvable:$true] %s17_s20  ;;  %s40_s22 = int_to_ptr.vmem [resolvable:$true] %s39_s22 }
  0x10   :  { %s829_s23 = scalar_lea.vmem %s18_s20, 64  ;;  %p834_p6 = scmp.lt.s32.totalorder %s18_s20, %s18_s20 }
  0x11   :  { %p830_p5 = scmp.ne.s32.totalorder %s18_s20, %s829_s23  ;;  %p835_p7 = scmp.lt.s32.totalorder %s829_s23, %s829_s23 }
  0x13   :  { %p836_p8 = por %p835_p7, %p834_p6 }
  0x15   :  { %p837_p9 = pnand %p836_p8, %p830_p5 }
  0x17   :  { %840 = shalt.err (!%p837_p9)
}
  0x18   :  { %20 = dma.hbm_to_vmem [thread:$0]  %s988_s0, 64, %s18_s20, [#allocation3]  }
  0x19   :  { %s849_s26 = scalar_lea.vmem %s40_s22, 128  ;;  %p854_p11 = scmp.lt.s32.totalorder %s40_s22, %s40_s22 }
  0x1a   :  { %p850_p10 = scmp.ne.s32.totalorder %s40_s22, %s849_s26  ;;  %p855_p12 = scmp.lt.s32.totalorder %s849_s26, %s849_s26 }
  0x1c   :  { %p856_p13 = por %p855_p12, %p854_p11 }
  0x1e   :  { %p857_p0 = pnand %p856_p13, %p850_p10 }
  0x20   :  { %860 = shalt.err (!%p857_p0)
}
  0x21   :  { %42 = dma.hbm_to_vmem [thread:$0]  %s990_s2, 128, %s40_s22, [#allocation6]  }
  0x22   :  { %881 = dma.done.wait [#allocation3], 64  }
  0x23   :  { %882 = vsyncadd [#allocation3], 4294967232 }
  0x24   :  { %883 = dma.done.wait [#allocation6], 4352  }
  0x25   :  { %884 = vsyncadd [#allocation6], 4294962944  ;;  %v892_v0 = vmov 0.0   ;;  %vm893_vm0 = vmmov 0   ;;  %v756_v1 = vld [vmem:[#allocation5] sm:$0xff]   ;;  %vm67_vm1 = vcmask 130048   ;;  %v57_v14 = vlaneseq }
  0x26   :  { %662 = vmatprep.subr.bf16.mxu0 %v892_v0  ;;  %664 = vmatprep.mubr.msk.bf16.mxu0 %vm893_vm0, %v892_v0  ;;  %v53_v2 = vld [vmem:[#allocation2] sm:$0xf]  ;;  %v757_v3 = vld [vmem:[#allocation5 + $0x40] sm:$0xff]   ;;  %v759_v5 = vld [vmem:[#allocation5 + $0x30] sm:$0xff]   ;;  %s894_s0 = smov [#allocation8]  }
  0x27   :  { %668 = vmatprep.subr.bf16.mxu1 %v892_v0  ;;  %684 = vmatprep.mubr.msk.bf16.mxu1 %vm893_vm0, %v892_v0  ;;  %v758_v4 = vld [vmem:[#allocation5 + $0x38] sm:$0xff]   ;;  %v760_v6 = vld [vmem:[#allocation5 + $0x28] sm:$0xff]   ;;  %v761_v7 = vld [vmem:[#allocation5 + $0x20] sm:$0xff]   ;;  %v945_v15 = vshrl.u32 %v57_v14, 7  ;;  %s578_s2 = sshll.u32 %s894_s0, 4  ;;  %s579_s2 = int_to_ptr.vmem [resolvable:$true] %s578_s2 }
  0x28   :  { %663 = vmatpush3.bf16.msra.mxu0 %v756_v1  ;;  %669 = vmatpush3.bf16.msra.mxu1 %v757_v3  ;;  %v762_v8 = vld [vmem:[#allocation5 + $0x18] sm:$0xff]   ;;  %v763_v9 = vld [vmem:[#allocation5 + $0x10] sm:$0xff]   ;;  %v764_v10 = vld [vmem:[#allocation5 + $0x8] sm:$0xff]   ;;  %s861_s28 = scalar_lea.vmem %s579_s2, 128  ;;  %p866_p2 = scmp.lt.s32.totalorder %s579_s2, %s579_s2 }
  0x29   :  { %688 = vmatprep.subr.bf16.mxu0 %v892_v0  ;;  %670 = vmatprep.subr.bf16.mxu1 %v892_v0  ;;  %v765_v11 = vld [vmem:[#allocation5 + $0x80] sm:$0xff]   ;;  %v766_v12 = vld [vmem:[#allocation5 + $0x78] sm:$0xff]   ;;  %v767_v13 = vld [vmem:[#allocation5 + $0x70] sm:$0xff]   ;;  %v59_v16 = vsub.s32 0, %v945_v15  ;;  %v131_v34 = vsub.s32 1, %v945_v15  ;;  %v241_v51 = vsub.s32 2, %v945_v15  ;;  %p862_p1 = scmp.ne.s32.totalorder %s579_s2, %s861_s28  ;;  %p867_p3 = scmp.lt.s32.totalorder %s861_s28, %s861_s28 }
  0x2a   :  { %v948_v17 = vld [vmem:[#allocation7] sm:$0xff]  ;;  %v769_v27 = vld [vmem:[#allocation5 + $0x60] sm:$0xff]   ;;  %v770_v28 = vld [vmem:[#allocation5 + $0x58] sm:$0xff]  }
  0x2b   :  { %665 = vmatmul.mubr.msk.bf16.vlgmr.msra.gmra.mxu0 %vm67_vm1, %v53_v2  ;;  %v60_v18 = vrot.slane %v948_v17, %v59_v16  ;;  %v768_v26 = vld [vmem:[#allocation5 + $0x68] sm:$0xff]   ;;  %v771_v29 = vld [vmem:[#allocation5 + $0x50] sm:$0xff]   ;;  %v773_v31 = vld [vmem:[#allocation5 + $0xc0] sm:$0xff]   ;;  %v132_v35 = vrot.slane %v948_v17, %v131_v34  ;;  %v242_v52 = vrot.slane %v948_v17, %v241_v51  ;;  %v351_v2 = vsub.s32 3, %v945_v15  ;;  %p868_p4 = por %p867_p3, %p866_p2 }
  0x2c   :  { %704 = vmatprep.mubr.msk.bf16.mxu0 %vm893_vm0, %v892_v0  ;;  %671 = vmatpush3.bf16.msra.mxu1 %v758_v4  ;;  %v772_v30 = vld [vmem:[#allocation5 + $0x48] sm:$0xff]   ;;  %v774_v32 = vld [vmem:[#allocation5 + $0xb8] sm:$0xff]   ;;  %v775_v33 = vld [vmem:[#allocation5 + $0xb0] sm:$0xff]  }
  0x2d   :  { %672 = vmatprep.subr.bf16.mxu1 %v892_v0  ;;  %689 = vmatpush3.bf16.msra.mxu0 %v765_v11  ;;  %v776_v43 = vld [vmem:[#allocation5 + $0xa8] sm:$0xff]   ;;  %v777_v44 = vld [vmem:[#allocation5 + $0xa0] sm:$0xff]   ;;  %v778_v45 = vld [vmem:[#allocation5 + $0x98] sm:$0xff]   ;;  %v352_v3 = vrot.slane %v948_v17, %v351_v2  ;;  %v461_v11 = vsub.s32 4, %v945_v15  ;;  %p869_p5 = pnand %p868_p4, %p862_p1 }
  0x2e   :  { %690 = vmatprep.subr.bf16.mxu0 %v892_v0  ;;  %v779_v46 = vld [vmem:[#allocation5 + $0x90] sm:$0xff]   ;;  %v780_v47 = vld [vmem:[#allocation5 + $0x88] sm:$0xff]   ;;  %v781_v48 = vld [vmem:[#allocation5 + $0x100] sm:$0xff]  }
  0x2f   :  { %v782_v49 = vld [vmem:[#allocation5 + $0xf8] sm:$0xff]   ;;  %v783_v50 = vld [vmem:[#allocation5 + $0xf0] sm:$0xff]   ;;  %v784_v60 = vld [vmem:[#allocation5 + $0xe8] sm:$0xff]  }
  0x30   :  { %673 = vmatpush3.bf16.msra.mxu1 %v759_v5  ;;  %v785_v61 = vld [vmem:[#allocation5 + $0xe0] sm:$0xff]   ;;  %v786_v62 = vld [vmem:[#allocation5 + $0xd8] sm:$0xff]   ;;  %v787_v63 = vld [vmem:[#allocation5 + $0xd0] sm:$0xff]  }
  0x31   :  { %674 = vmatprep.subr.bf16.mxu1 %v892_v0  ;;  %691 = vmatpush3.bf16.msra.mxu0 %v766_v12  ;;  %v788_v1 = vld [vmem:[#allocation5 + $0xc8] sm:$0xff]   ;;  %v462_v12 = vrot.slane %v948_v17, %v461_v11 }
  0x32   :  { %692 = vmatprep.subr.bf16.mxu0 %v892_v0 }
  0x34   :  { %675 = vmatpush3.bf16.msra.mxu1 %v760_v6 }
  0x35   :  { %676 = vmatprep.subr.bf16.mxu1 %v892_v0  ;;  %693 = vmatpush3.bf16.msra.mxu0 %v767_v13  ;;  %v552_v13 = vand.u32 127, %v57_v14 }
  0x36   :  { %694 = vmatprep.subr.bf16.mxu0 %v892_v0 }
  0x37   :  { %vm553_vm2 = vcmp.lt.s32.totalorder %v552_v13, 4  ;;  %vm554_vm3 = vcmp.ge.s32.totalorder %v552_v13, 4  ;;  %vm555_vm4 = vcmp.lt.s32.totalorder %v552_v13, 8 }
  0x38   :  { %677 = vmatpush3.bf16.msra.mxu1 %v761_v7  ;;  %vm556_vm5 = vmand %vm554_vm3, %vm555_vm4 }
  0x39   :  { %678 = vmatprep.subr.bf16.mxu1 %v892_v0  ;;  %695 = vmatpush3.bf16.msra.mxu0 %v768_v26 }
  0x3a   :  { %696 = vmatprep.subr.bf16.mxu0 %v892_v0 }
  0x3c   :  { %679 = vmatpush3.bf16.msra.mxu1 %v762_v8 }
  0x3d   :  { %680 = vmatprep.subr.bf16.mxu1 %v892_v0  ;;  %697 = vmatpush3.bf16.msra.mxu0 %v769_v27 }
  0x3e   :  { %698 = vmatprep.subr.bf16.mxu0 %v892_v0 }
  0x40   :  { %681 = vmatpush3.bf16.msra.mxu1 %v763_v9 }
  0x41   :  { %682 = vmatprep.subr.bf16.mxu1 %v892_v0  ;;  %699 = vmatpush3.bf16.msra.mxu0 %v770_v28 }
  0x42   :  { %700 = vmatprep.subr.bf16.mxu0 %v892_v0 }
  0x44   :  { %683 = vmatpush3.bf16.msra.mxu1 %v764_v10 }
  0x45   :  { %708 = vmatprep.subr.bf16.mxu1 %v892_v0  ;;  %701 = vmatpush3.bf16.msra.mxu0 %v771_v29 }
  0x46   :  { %702 = vmatprep.subr.bf16.mxu0 %v892_v0 }
  0x49   :  { %703 = vmatpush3.bf16.msra.mxu0 %v772_v30 }
  0x4a   :  { %728 = vmatprep.subr.bf16.mxu0 %v892_v0 }
  0xeb   :  { %v105_v19 = vpop.f32.mrf.mxu0 }
  0xec   :  { %v106_v20 = vadd.f32 %v105_v19, %v60_v18 }
  0xed   :  { %v666_v21 = vpop.f32.mrf.mxu0 }
  0xee   :  { %789 = vtanh.f32 %v106_v20 }
  0xef   :  { %v108_v22 = vpop.f32.mrf.mxu0 }
  0xf1   :  { %v667_v23 = vpop.f32.mrf.mxu0 }
  0xfb   :  { %v790_v24 = vpop.eup %789 }
  0xfc   :  { %v112_v25 = vpack.c.bf16 %v790_v24, %v790_v24 }
  0xfe   :  { %685 = vmatmul.mubr.bf16.vlgmr.msra.gmra.mxu1 %v112_v25 }
  0xff   :  { %724 = vmatprep.mubr.msk.bf16.mxu1 %vm893_vm0, %v892_v0  ;;  %709 = vmatpush3.bf16.msra.mxu1 %v773_v31 }
 0x100   :  { %710 = vmatprep.subr.bf16.mxu1 %v892_v0 }
 0x103   :  { %711 = vmatpush3.bf16.msra.mxu1 %v774_v32 }
 0x104   :  { %712 = vmatprep.subr.bf16.mxu1 %v892_v0 }
 0x107   :  { %713 = vmatpush3.bf16.msra.mxu1 %v775_v33 }
 0x108   :  { %714 = vmatprep.subr.bf16.mxu1 %v892_v0 }
 0x10b   :  { %715 = vmatpush3.bf16.msra.mxu1 %v776_v43 }
 0x10c   :  { %716 = vmatprep.subr.bf16.mxu1 %v892_v0 }
 0x10f   :  { %717 = vmatpush3.bf16.msra.mxu1 %v777_v44 }
 0x110   :  { %718 = vmatprep.subr.bf16.mxu1 %v892_v0 }
 0x113   :  { %719 = vmatpush3.bf16.msra.mxu1 %v778_v45 }
 0x114   :  { %720 = vmatprep.subr.bf16.mxu1 %v892_v0 }
 0x117   :  { %721 = vmatpush3.bf16.msra.mxu1 %v779_v46 }
 0x118   :  { %722 = vmatprep.subr.bf16.mxu1 %v892_v0 }
 0x11b   :  { %723 = vmatpush3.bf16.msra.mxu1 %v780_v47 }
 0x1be   :  { %v215_v36 = vpop.f32.mrf.mxu1 }
 0x1bf   :  { %v216_v37 = vadd.f32 %v215_v36, %v132_v35 }
 0x1c0   :  { %v686_v38 = vpop.f32.mrf.mxu1 }
 0x1c1   :  { %791 = vtanh.f32 %v216_v37 }
 0x1c2   :  { %v218_v39 = vpop.f32.mrf.mxu1 }
 0x1c4   :  { %v687_v40 = vpop.f32.mrf.mxu1 }
 0x1ce   :  { %v792_v41 = vpop.eup %791 }
 0x1cf   :  { %v222_v42 = vpack.c.bf16 %v792_v41, %v792_v41 }
 0x1d1   :  { %705 = vmatmul.mubr.bf16.vlgmr.msra.gmra.mxu0 %v222_v42 }
 0x1d2   :  { %744 = vmatprep.mubr.msk.bf16.mxu0 %vm893_vm0, %v892_v0  ;;  %729 = vmatpush3.bf16.msra.mxu0 %v781_v48 }
 0x1d3   :  { %730 = vmatprep.subr.bf16.mxu0 %v892_v0 }
 0x1d6   :  { %731 = vmatpush3.bf16.msra.mxu0 %v782_v49 }
 0x1d7   :  { %732 = vmatprep.subr.bf16.mxu0 %v892_v0 }
 0x1da   :  { %733 = vmatpush3.bf16.msra.mxu0 %v783_v50 }
 0x1db   :  { %734 = vmatprep.subr.bf16.mxu0 %v892_v0 }
 0x1de   :  { %735 = vmatpush3.bf16.msra.mxu0 %v784_v60 }
 0x1df   :  { %736 = vmatprep.subr.bf16.mxu0 %v892_v0 }
 0x1e2   :  { %737 = vmatpush3.bf16.msra.mxu0 %v785_v61 }
 0x1e3   :  { %738 = vmatprep.subr.bf16.mxu0 %v892_v0 }
 0x1e6   :  { %739 = vmatpush3.bf16.msra.mxu0 %v786_v62 }
 0x1e7   :  { %740 = vmatprep.subr.bf16.mxu0 %v892_v0 }
 0x1ea   :  { %741 = vmatpush3.bf16.msra.mxu0 %v787_v63 }
 0x1eb   :  { %742 = vmatprep.subr.bf16.mxu0 %v892_v0 }
 0x1ee   :  { %743 = vmatpush3.bf16.msra.mxu0 %v788_v1 }
 0x291   :  { %v325_v53 = vpop.f32.mrf.mxu0 }
 0x292   :  { %v326_v54 = vadd.f32 %v325_v53, %v242_v52 }
 0x293   :  { %v706_v55 = vpop.f32.mrf.mxu0 }
 0x294   :  { %793 = vtanh.f32 %v326_v54 }
 0x295   :  { %v328_v56 = vpop.f32.mrf.mxu0 }
 0x297   :  { %v707_v57 = vpop.f32.mrf.mxu0 }
 0x2a1   :  { %v794_v58 = vpop.eup %793 }
 0x2a2   :  { %v332_v59 = vpack.c.bf16 %v794_v58, %v794_v58 }
 0x2a4   :  { %725 = vmatmul.mubr.bf16.vlgmr.msra.gmra.mxu1 %v332_v59 }
 0x364   :  { %v435_v4 = vpop.f32.mrf.mxu1 }
 0x365   :  { %v436_v5 = vadd.f32 %v435_v4, %v352_v3 }
 0x366   :  { %v726_v6 = vpop.f32.mrf.mxu1 }
 0x367   :  { %795 = vtanh.f32 %v436_v5 }
 0x368   :  { %v438_v7 = vpop.f32.mrf.mxu1 }
 0x36a   :  { %v727_v8 = vpop.f32.mrf.mxu1 }
 0x374   :  { %v796_v9 = vpop.eup %795 }
 0x375   :  { %v442_v10 = vpack.c.bf16 %v796_v9, %v796_v9 }
 0x377   :  { %745 = vmatmul.mubr.bf16.vlgmr.msra.gmra.mxu0 %v442_v10 }
 0x437   :  { %v545_v0 = vpop.f32.mrf.mxu0 }
 0x438   :  { %v546_v16 = vadd.f32 %v545_v0, %v462_v12 }
 0x439   :  { %v746_v18 = vpop.f32.mrf.mxu0 }
 0x43a   :  { %v622_v19 = vclamps-f32 %v546_v16, 20.0 }
 0x43b   :  { %v548_v20 = vpop.f32.mrf.mxu0 }
 0x43c   :  { %v559_v21 = vmul.f32 2.0, %v622_v19 }
 0x43d   :  { %v747_v22 = vpop.f32.mrf.mxu0 }
 0x43e   :  { %v560_v23 = vsel %vm553_vm2, %v559_v21, %v546_v16 }
 0x43f   :  { %v561_v24 = vmul.f32 1.442695, %v560_v23 }
 0x441   :  { %797 = vpow2.f32 %v561_v24 }
 0x44e   :  { %v798_v25 = vpop.eup %797 }
 0x44f   :  { %v564_v26 = vadd.f32 1.0, %v798_v25  ;;  %v623_v15 = vadd.f32 -1.0, %v798_v25  ;;  %v569_v28 = vsel %vm556_vm5, %v798_v25, %v546_v16 }
 0x451   :  { %799 = vrcp.f32 %v564_v26 }
 0x45e   :  { %v800_v17 = vpop.eup %799 }
 0x45f   :  { %v566_v14 = vmul.f32 %v800_v17, %v623_v15 }
 0x461   :  { %v567_v27 = vmul.f32 2.0, %v566_v14 }
 0x463   :  { %v570_v29 = vsel %vm553_vm2, %v567_v27, %v569_v28 }
 0x464   :  { %571 = vst [vmem:[#allocation8] sm:$0xff] %v570_v29 }
 0x465   :  { %872 = shalt.err (!%p869_p5)
}
 0x466   :  { %581 = dma.vmem_to_hbm [thread:$0]  %s579_s2, 128, %s991_s3, [#allocation4]  }
 0x467   :  { %885 = dma.done.wait [#allocation4], 128  }
 0x468   :  { %886 = vsyncadd [#allocation4], 4294967168 }
 0x469   :  { %585 = vsyncpa [#allocation3], 1 }
 0x46a   :  { %586 = vsyncpa [#allocation6], 1 }
 0x46b   :  { %587 = vsyncpa [#allocation4], 1 }

</bundles_post_ra>
